<compile_context>
chip_gen: v5e
topology: v5e:2x2
jax: 0.10.0
libtpu: 0.0.40
codegen_flags: <defaults>
</compile_context>

<pallas_src>
import jax
import jax.numpy as jnp
from jax import lax
from jax.experimental import pallas as pl
from jax.experimental.pallas import tpu as pltpu


def _round_up(n, m):
    return (n + m - 1) // m * m


def _tile_bytes(r, c, itemsize):
    return _round_up(max(int(r), 1), 8) * _round_up(max(int(c), 1), 128) * int(itemsize)


def _vmem_limit_bytes():
    """Generation-aware VMEM request: ~80% of per-core capacity (leaves Mosaic headroom)."""
    cap = 64 * 1024 * 1024  # conservative default (v7x per-TensorCore)
    try:
        info = pltpu.get_tpu_info()
        c = getattr(info, "vmem_capacity_bytes", None)
        if c:
            cap = int(c)
    except Exception:
        pass
    return int(cap * 0.80)  # ~102 MiB on 128-MiB v5e/v6e, ~51 MiB on 64-MiB v7x


def _footprint_bytes(tile_b, tk, in_size, hid_pad):
    """Conservative VMEM footprint: double-buffered pipeline buffers + f32 temporaries."""
    nbuf = 2  # assume the pipeline double-buffers every BlockSpec input/output
    resident = nbuf * (_tile_bytes(hid_pad, in_size, 2) + _tile_bytes(hid_pad, 1, 4))   # w1, b1
    streamed = nbuf * (_tile_bytes(tk, hid_pad, 2) + 2 * _tile_bytes(tk, 1, 4))         # w2, b2, w3
    io = nbuf * (_tile_bytes(tile_b, in_size, 4) + _tile_bytes(1, tile_b, 4))           # x, out
    scratch = _tile_bytes(hid_pad, tile_b, 2)                                           # bf16 h1
    temps = _tile_bytes(hid_pad, tile_b, 4) + 2 * _tile_bytes(tk, tile_b, 4)            # f32 h1/h2
    return resident + streamed + io + scratch + temps


def _plan_tiles(B, in_size, hid_pad, plan_budget):
    """Pick (tile_b, tk): biggest batch tile / biggest w2 row-block that fit the budget."""
    tb_candidates = [B] if B <= 512 else [512, 256, 128]
    n128 = hid_pad // 128
    tk_candidates = sorted({128 * d for d in range(1, n128 + 1) if n128 % d == 0},
                           reverse=True)  # multiples of 128 that divide hid_pad exactly
    for tb in tb_candidates:
        for tk in tk_candidates:
            if _footprint_bytes(tb, tk, in_size, hid_pad) <= plan_budget:
                return tb, tk
    # TODO(synk): also stream w1 over the input-feature dim when hidden*input alone exceeds
    # the VMEM budget (very large input_size); the fallback below may still spill.
    return tb_candidates[-1], 128


def _mlp_kernel(x_ref, w1_ref, b1_ref, w2_ref, b2_ref, w3_ref, b3_ref, o_ref, h1_ref):
    # x_ref : (tile_b, in)     f32   -- natural layout, cast to bf16 in-kernel
    # w1_ref: (hid_pad, in)    bf16  -- VMEM-resident (torch (out, in) layout)
    # b1_ref: (hid_pad, 1)     f32
    # w2_ref: (tk, hid_pad)    bf16  -- streamed row-block of fc2 weight
    # b2_ref: (tk, 1)          f32
    # w3_ref: (tk, 1)          f32   -- matching rows of fc3 weight (as a column)
    # b3_ref: (1,)             f32   -- SMEM scalar
    # o_ref : (1, tile_b)      f32   -- lane-dense output row, accumulated across j
    # h1_ref: (hid_pad, tile_b) bf16 -- scratch, persists across the j (hidden-block) axis
    j = pl.program_id(1)

    @pl.when(j == 0)
    def _():
        xb = x_ref[...].astype(jnp.bfloat16)
        # H1 = W1 @ X^T : contract the feature dim of both operands (no wrapper transpose).
        h1 = lax.dot_general(w1_ref[...], xb,
                             dimension_numbers=(((1,), (1,)), ((), ())),
                             preferred_element_type=jnp.float32)      # (hid_pad, tile_b)
        h1 = jnp.maximum(h1 + b1_ref[...], 0.0)                       # f32 VPU bias + ReLU
        h1_ref[...] = h1.astype(jnp.bfloat16)                         # bf16 intermediate
        o_ref[...] = jnp.zeros_like(o_ref) + b3_ref[0]                # fold fc3 bias into init

    # Partial fc2 rows for this hidden block, then fold straight into the fc3 reduction.
    h2 = jnp.dot(w2_ref[...], h1_ref[...], preferred_element_type=jnp.float32)  # (tk, tile_b)
    h2 = jnp.maximum(h2 + b2_ref[...], 0.0)
    o_ref[...] += jnp.sum(h2 * w3_ref[...], axis=0, keepdims=True)


def prepare_params(params):
    """One-time conversion of torch-layout params to kernel layout (outside the hot path)."""
    hid, in_size = params["fc1_w"].shape
    hid_pad = _round_up(hid, 128)
    w1 = jnp.zeros((hid_pad, in_size), jnp.bfloat16).at[:hid, :].set(
        params["fc1_w"].astype(jnp.bfloat16))
    b1 = jnp.zeros((hid_pad, 1), jnp.float32).at[:hid, 0].set(
        params["fc1_b"].astype(jnp.float32))
    w2 = jnp.zeros((hid_pad, hid_pad), jnp.bfloat16).at[:hid, :hid].set(
        params["fc2_w"].astype(jnp.bfloat16))
    b2 = jnp.zeros((hid_pad, 1), jnp.float32).at[:hid, 0].set(
        params["fc2_b"].astype(jnp.float32))
    w3 = jnp.zeros((hid_pad, 1), jnp.float32).at[:hid, 0].set(
        params["fc3_w"][0].astype(jnp.float32))
    b3 = params["fc3_b"].astype(jnp.float32).reshape((1,))
    # Padded hidden rows are all-zero -> stay exactly 0 through bias/ReLU and contribute 0 to fc3.
    return {"w1": w1, "b1": b1, "w2": w2, "b2": b2, "w3": w3, "b3": b3}


def three_layer_fc(x, kp, *, plan_vmem_bytes=None):
    """x: (B, input_size) float32; kp: prepare_params(...). Returns (B, 1) float32.

    plan_vmem_bytes (static): optional override of the tile-planning budget (testing /
    forcing the streamed-w2 path); the actual vmem_limit_bytes stays generation-aware.
    """
    B, in_size = x.shape
    hid_pad, w1_in = kp["w1"].shape
    assert w1_in == in_size, (w1_in, in_size)

    vmem_limit = _vmem_limit_bytes()
    plan_budget = vmem_limit if plan_vmem_bytes is None else min(vmem_limit, int(plan_vmem_bytes))
    tile_b, tk = _plan_tiles(B, in_size, hid_pad, plan_budget)
    num_b = -(-B // tile_b)
    num_k = hid_pad // tk
    b_pad = num_b * tile_b

    flops = 2 * b_pad * (in_size * hid_pad + hid_pad * hid_pad + hid_pad)
    w2_bytes = kp["w2"].size * 2 * (num_b if num_k > 1 else 1)  # re-streamed per batch tile
    bytes_accessed = (x.size * 4 + kp["w1"].size * 2 + w2_bytes
                      + (kp["b1"].size + kp["b2"].size + kp["w3"].size + 1) * 4
                      + b_pad * 4)

    out = pl.pallas_call(
        _mlp_kernel,
        out_shape=jax.ShapeDtypeStruct((1, b_pad), jnp.float32),
        grid=(num_b, num_k),
        in_specs=[
            pl.BlockSpec((tile_b, in_size), lambda i, j: (i, 0)),    # x : streamed batch tile
            pl.BlockSpec((hid_pad, in_size), lambda i, j: (0, 0)),   # w1: VMEM-resident
            pl.BlockSpec((hid_pad, 1), lambda i, j: (0, 0)),         # b1: VMEM-resident
            pl.BlockSpec((tk, hid_pad), lambda i, j: (j, 0)),        # w2: hidden-row blocks
            pl.BlockSpec((tk, 1), lambda i, j: (j, 0)),              # b2 block
            pl.BlockSpec((tk, 1), lambda i, j: (j, 0)),              # w3 block
            pl.BlockSpec(memory_space=pltpu.MemorySpace.SMEM),       # b3 scalar
        ],
        out_specs=pl.BlockSpec((1, tile_b), lambda i, j: (0, i)),    # lane-dense, resident over j
        scratch_shapes=[pltpu.VMEM((hid_pad, tile_b), jnp.bfloat16)],
        compiler_params=pltpu.CompilerParams(
            dimension_semantics=("parallel", "arbitrary"),
            vmem_limit_bytes=vmem_limit,
        ),
        cost_estimate=pl.CostEstimate(flops=int(flops), transcendentals=0,
                                      bytes_accessed=int(bytes_accessed)),
    )(x, kp["w1"], kp["b1"], kp["w2"], kp["b2"], kp["w3"], kp["b3"])

    # Columns beyond B (partial last batch tile) are garbage by construction -> sliced away.
    return out[0, :B].reshape(B, 1)


def init_params(key, input_size, hidden_size):
    # Deterministic init mirroring nn.Linear shapes (uniform in +/- 1/sqrt(fan_in)).
    ks = jax.random.split(key, 6)

    def u(k, shape, fan_in):
        bound = 1.0 / jnp.sqrt(fan_in)
        return jax.random.uniform(k, shape, jnp.float32, -bound, bound)

    return {
        "fc1_w": u(ks[0], (hidden_size, input_size), input_size),
        "fc1_b": u(ks[1], (hidden_size,), input_size),
        "fc2_w": u(ks[2], (hidden_size, hidden_size), hidden_size),
        "fc2_b": u(ks[3], (hidden_size,), hidden_size),
        "fc3_w": u(ks[4], (1, hidden_size), hidden_size),
        "fc3_b": u(ks[5], (1,), hidden_size),
    }


def reference_f32(x, p):
    # PyTorch-semantics fp32 reference.
    h1 = jnp.maximum(x @ p["fc1_w"].T + p["fc1_b"], 0.0)
    h2 = jnp.maximum(h1 @ p["fc2_w"].T + p["fc2_b"], 0.0)
    return h2 @ p["fc3_w"].T + p["fc3_b"]


def reference_bf16_math(x, p):
    # Same numerics as the kernel: bf16 matmul operands, f32 accumulation / element-wise.
    xb = x.astype(jnp.bfloat16)
    w1 = p["fc1_w"].T.astype(jnp.bfloat16)
    w2 = p["fc2_w"].T.astype(jnp.bfloat16)
    h1 = jnp.maximum(jnp.dot(xb, w1, preferred_element_type=jnp.float32) + p["fc1_b"], 0.0)
    h2 = jnp.maximum(jnp.dot(h1.astype(jnp.bfloat16), w2,
                             preferred_element_type=jnp.float32) + p["fc2_b"], 0.0)
    return jnp.sum(h2 * p["fc3_w"][0][None, :], axis=-1, keepdims=True) + p["fc3_b"]


if __name__ == "__main__":
    key = jax.random.PRNGKey(0)
    k_x, k_p, k_x2, k_p2 = jax.random.split(key, 4)

    fwd = jax.jit(three_layer_fc, static_argnames=("plan_vmem_bytes",))

    # --- Test 1: canonical small config (single batch tile, fully resident weights) ---
    batch, input_size, hidden_size = 8, 32, 32
    x = jax.random.normal(k_x, (batch, input_size), dtype=jnp.float32)
    params = init_params(k_p, input_size, hidden_size)
    kparams = prepare_params(params)

    out = jax.block_until_ready(fwd(x, kparams))
    assert out.shape == (batch, 1), out.shape
    ref_bf = reference_bf16_math(x, params)
    ref_32 = reference_f32(x, params)
    assert jnp.allclose(out, ref_bf, atol=1e-2, rtol=1e-2), "mismatch vs bf16-matched reference"
    assert jnp.allclose(out, ref_32, atol=5e-2, rtol=5e-2), "mismatch vs fp32 reference"

    # --- Test 2: exercise multi-batch-tile + streamed-w2 (reduction grid axis) path ---
    batch2, input2, hidden2 = 1024, 48, 160
    x2 = jax.random.normal(k_x2, (batch2, input2), dtype=jnp.float32)
    params2 = init_params(k_p2, input2, hidden2)
    kparams2 = prepare_params(params2)
    # Tiny planning budget forces small batch tiles and tk < hid_pad (streamed w2);
    # the actual vmem_limit_bytes stays at the generation-aware value.
    out2 = jax.block_until_ready(fwd(x2, kparams2, plan_vmem_bytes=1_500_000))
    assert out2.shape == (batch2, 1), out2.shape
    ref2 = reference_bf16_math(x2, params2)
    assert jnp.allclose(out2, ref2, atol=2e-2, rtol=2e-2), "mismatch in streamed-w2 path"

    print("KERNEL_OK")
</pallas_src>

<mosaic_0001>
module attributes {stable_mosaic.version = 11 : i64} {
  func.func @_mlp_kernel(%arg0: i32, %arg1: i32, %arg2: memref<8x32xf32, #tpu.memory_space<vmem>>, %arg3: memref<128x32xbf16, #tpu.memory_space<vmem>>, %arg4: memref<128x1xf32, #tpu.memory_space<vmem>>, %arg5: memref<128x128xbf16, #tpu.memory_space<vmem>>, %arg6: memref<128x1xf32, #tpu.memory_space<vmem>>, %arg7: memref<128x1xf32, #tpu.memory_space<vmem>>, %arg8: memref<1xf32, #tpu.memory_space<smem>>, %arg9: memref<1x8xf32, #tpu.memory_space<vmem>>, %arg10: memref<128x8xbf16, #tpu.memory_space<vmem>>) attributes {dimension_semantics = [#tpu.dimension_semantics<parallel>, #tpu.dimension_semantics<arbitrary>], iteration_bounds = array<i64: 1, 1>, scalar_prefetch = 0 : i64, scratch_operands = 1 : i64, tpu.core_type = #tpu.core_type<tc>, window_params = [{transform_indices = @transform_0, window_bounds = array<i64: 8, 32>}, {pipeline_mode = #tpu.pipeline_mode<synchronous>, transform_indices = @transform_1, window_bounds = array<i64: 128, 32>}, {pipeline_mode = #tpu.pipeline_mode<synchronous>, transform_indices = @transform_2, window_bounds = array<i64: 128, 1>}, {transform_indices = @transform_3, window_bounds = array<i64: 128, 128>}, {transform_indices = @transform_4, window_bounds = array<i64: 128, 1>}, {transform_indices = @transform_5, window_bounds = array<i64: 128, 1>}, {transform_indices = @transform_6, window_bounds = array<i64: 1>}, {transform_indices = @transform_7, window_bounds = array<i64: 1, 8>}]} {
    %c0_i32 = arith.constant 0 : i32
    %0 = arith.cmpi eq, %arg1, %c0_i32 : i32
    %1 = arith.extui %0 : i1 to i32
    %c0_i32_0 = arith.constant 0 : i32
    %2 = arith.cmpi ne, %1, %c0_i32_0 : i32
    scf.if %2 {
      %c0_14 = arith.constant 0 : index
      %c0_15 = arith.constant 0 : index
      %19 = vector.load %arg2[%c0_14, %c0_15] : memref<8x32xf32, #tpu.memory_space<vmem>>, vector<8x32xf32>
      %20 = arith.truncf %19 : vector<8x32xf32> to vector<8x32xbf16>
      %c0_16 = arith.constant 0 : index
      %c0_17 = arith.constant 0 : index
      %21 = vector.load %arg3[%c0_16, %c0_17] : memref<128x32xbf16, #tpu.memory_space<vmem>>, vector<128x32xbf16>
      %cst_18 = arith.constant dense<0.000000e+00> : vector<128x8xf32>
      %22 = tpu.matmul %21, %20, %cst_18 {dimension_numbers = #tpu.dot_dimension_numbers<[1], [1], [0], [0], [0, 0, 1, 0], [], []>} : vector<128x32xbf16>, vector<8x32xbf16>, vector<128x8xf32> -> vector<128x8xf32>
      %c0_19 = arith.constant 0 : index
      %c0_20 = arith.constant 0 : index
      %23 = vector.load %arg4[%c0_19, %c0_20] : memref<128x1xf32, #tpu.memory_space<vmem>>, vector<128x1xf32>
      %24 = vector.broadcast %23 : vector<128x1xf32> to vector<128x8xf32>
      %25 = arith.addf %22, %24 : vector<128x8xf32>
      %cst_21 = arith.constant 0.000000e+00 : f32
      %26 = vector.broadcast %cst_21 : f32 to vector<128x8xf32>
      %27 = arith.maximumf %25, %26 : vector<128x8xf32>
      %28 = arith.truncf %27 : vector<128x8xf32> to vector<128x8xbf16>
      %c0_22 = arith.constant 0 : index
      %c0_23 = arith.constant 0 : index
      %29 = vector.load %arg10[%c0_22, %c0_23] : memref<128x8xbf16, #tpu.memory_space<vmem>>, vector<128x8xbf16>
      tpu.vector_store %arg10[%c0_22, %c0_23], %28 {strides = array<i32>} : memref<128x8xbf16, #tpu.memory_space<vmem>>, vector<128x8xbf16>,
      %cst_24 = arith.constant 0.000000e+00 : f32
      %30 = vector.broadcast %cst_24 : f32 to vector<1x8xf32>
      %c0_25 = arith.constant 0 : index
      %31 = memref.load %arg8[%c0_25] : memref<1xf32, #tpu.memory_space<smem>>
      %32 = vector.broadcast %31 : f32 to vector<1x8xf32>
      %33 = arith.addf %30, %32 : vector<1x8xf32>
      %c0_26 = arith.constant 0 : index
      %c0_27 = arith.constant 0 : index
      %34 = vector.load %arg9[%c0_26, %c0_27] : memref<1x8xf32, #tpu.memory_space<vmem>>, vector<1x8xf32>
      tpu.vector_store %arg9[%c0_26, %c0_27], %33 {strides = array<i32>} : memref<1x8xf32, #tpu.memory_space<vmem>>, vector<1x8xf32>,
    } else {
    }
    %c0 = arith.constant 0 : index
    %c0_1 = arith.constant 0 : index
    %3 = vector.load %arg5[%c0, %c0_1] : memref<128x128xbf16, #tpu.memory_space<vmem>>, vector<128x128xbf16>
    %c0_2 = arith.constant 0 : index
    %c0_3 = arith.constant 0 : index
    %4 = vector.load %arg10[%c0_2, %c0_3] : memref<128x8xbf16, #tpu.memory_space<vmem>>, vector<128x8xbf16>
    %cst = arith.constant dense<0.000000e+00> : vector<128x8xf32>
    %5 = tpu.matmul %3, %4, %cst {dimension_numbers = #tpu.dot_dimension_numbers<[1], [0], [0], [1], [0, 0, 1, 1], [], []>} : vector<128x128xbf16>, vector<128x8xbf16>, vector<128x8xf32> -> vector<128x8xf32>
    %c0_4 = arith.constant 0 : index
    %c0_5 = arith.constant 0 : index
    %6 = vector.load %arg6[%c0_4, %c0_5] : memref<128x1xf32, #tpu.memory_space<vmem>>, vector<128x1xf32>
    %7 = vector.broadcast %6 : vector<128x1xf32> to vector<128x8xf32>
    %8 = arith.addf %5, %7 : vector<128x8xf32>
    %cst_6 = arith.constant 0.000000e+00 : f32
    %9 = vector.broadcast %cst_6 : f32 to vector<128x8xf32>
    %10 = arith.maximumf %8, %9 : vector<128x8xf32>
    %c0_7 = arith.constant 0 : index
    %c0_8 = arith.constant 0 : index
    %11 = vector.load %arg9[%c0_7, %c0_8] : memref<1x8xf32, #tpu.memory_space<vmem>>, vector<1x8xf32>
    %c0_9 = arith.constant 0 : index
    %c0_10 = arith.constant 0 : index
    %12 = vector.load %arg7[%c0_9, %c0_10] : memref<128x1xf32, #tpu.memory_space<vmem>>, vector<128x1xf32>
    %13 = vector.broadcast %12 : vector<128x1xf32> to vector<128x8xf32>
    %14 = arith.mulf %10, %13 : vector<128x8xf32>
    %cst_11 = arith.constant dense<0.000000e+00> : vector<8xf32>
    %15 = vector.multi_reduction <add>, %14, %cst_11 [0] : vector<128x8xf32> to vector<8xf32>
    %16 = vector.shape_cast %15 : vector<8xf32> to vector<1x8xf32>
    %17 = arith.addf %11, %16 : vector<1x8xf32>
    %c0_12 = arith.constant 0 : index
    %c0_13 = arith.constant 0 : index
    %18 = vector.load %arg9[%c0_12, %c0_13] : memref<1x8xf32, #tpu.memory_space<vmem>>, vector<1x8xf32>
    tpu.vector_store %arg9[%c0_12, %c0_13], %17 {strides = array<i32>} : memref<1x8xf32, #tpu.memory_space<vmem>>, vector<1x8xf32>,
    return
  }
  func.func @transform_0(%arg0: i32, %arg1: i32) -> (i32, i32) {
    %c0_i32 = arith.constant 0 : i32
    %c0_i32_0 = arith.constant 0 : i32
    return %arg0, %c0_i32 : i32, i32
  }
  func.func @transform_1(%arg0: i32, %arg1: i32) -> (i32, i32) {
    %c0_i32 = arith.constant 0 : i32
    %c0_i32_0 = arith.constant 0 : i32
    %c0_i32_1 = arith.constant 0 : i32
    return %c0_i32, %c0_i32_0 : i32, i32
  }
  func.func @transform_2(%arg0: i32, %arg1: i32) -> (i32, i32) {
    %c0_i32 = arith.constant 0 : i32
    %c0_i32_0 = arith.constant 0 : i32
    %c0_i32_1 = arith.constant 0 : i32
    return %c0_i32, %c0_i32_0 : i32, i32
  }
  func.func @transform_3(%arg0: i32, %arg1: i32) -> (i32, i32) {
    %c0_i32 = arith.constant 0 : i32
    %c0_i32_0 = arith.constant 0 : i32
    return %arg1, %c0_i32 : i32, i32
  }
  func.func @transform_4(%arg0: i32, %arg1: i32) -> (i32, i32) {
    %c0_i32 = arith.constant 0 : i32
    %c0_i32_0 = arith.constant 0 : i32
    return %arg1, %c0_i32 : i32, i32
  }
  func.func @transform_5(%arg0: i32, %arg1: i32) -> (i32, i32) {
    %c0_i32 = arith.constant 0 : i32
    %c0_i32_0 = arith.constant 0 : i32
    return %arg1, %c0_i32 : i32, i32
  }
  func.func @transform_6(%arg0: i32, %arg1: i32) -> i32 {
    %c0_i32 = arith.constant 0 : i32
    %c0_i32_0 = arith.constant 0 : i32
    return %c0_i32 : i32
  }
  func.func @transform_7(%arg0: i32, %arg1: i32) -> (i32, i32) {
    %c0_i32 = arith.constant 0 : i32
    %c0_i32_0 = arith.constant 0 : i32
    return %c0_i32, %arg0 : i32, i32
  }
}

</mosaic_0001>

<bundles_post_ra>
// kernel: three_layer_fc.1
= control target key start
LH: loop header
LB: loop body
LE: loop exit
PB: predicated region body
PF: predicated region fallthrough
CT: control target
= control target key end

     0   :  { %v945_v3 = vmov 0   ;;  %vm187_vm0 = vcmask 261120   ;;  %s1270_s0 = inlined_call_operand.vmem [shape: f32[8,32], index: 0, kind: input, shape index: {}]   ;;  %s1271_s1 = inlined_call_operand.vmem [shape: bf16[128,32], index: 1, kind: input, shape index: {}]   ;;  %s1272_s2 = inlined_call_operand.vmem [shape: f32[128,1], index: 2, kind: input, shape index: {}]   ;;  %s1273_s3 = inlined_call_operand.vmem [shape: bf16[128,128], index: 3, kind: input, shape index: {}]   ;;  %s1274_s4 = inlined_call_operand.vmem [shape: f32[128,1], index: 4, kind: input, shape index: {}]   ;;  %s1275_s5 = inlined_call_operand.vmem [shape: f32[128,1], index: 5, kind: input, shape index: {}]   ;;  %s1276_s6 = inlined_call_operand.<no memory space> [shape: f32[1], index: 6, kind: input, shape index: {}]   ;;  %s1277_s7 = inlined_call_operand.hbm [shape: f32[1,8], index: 7, kind: output, shape index: {}]  }
   0x1   :  { %v65_v0 = vld [vmem:[%s1272_s2 + $0x70] sm:$0xff]  ;;  %v63_v1 = vld [vmem:[%s1272_s2 + $0x60] sm:$0xff]  ;;  %918 = vset.pattern.permute.xlu2 %v945_v3  ;;  %917 = vset.pattern.permute.xlu1 %v945_v3  ;;  %v66_v7 = vld [vmem:[%s1272_s2 + $0x78] sm:$0xff] }
   0x2   :  { %v61_v2 = vld [vmem:[%s1272_s2 + $0x50] sm:$0xff]  ;;  %v33_v4 = vld [vmem:[%s1270_s0] sm:$0xff]  ;;  %916 = vset.pattern.permute.xlu0 %v945_v3  ;;  %129 = vperm.xlu1 %917, %v63_v1   ;;  %v64_v8 = vld [vmem:[%s1272_s2 + $0x68] sm:$0xff] }
   0x3   :  { %v34_v5 = vpack.c.bf16 %v33_v4, %v33_v4  ;;  %139 = vperm.xlu0 %916, %v65_v0   ;;  %119 = vperm.xlu2 %918, %v61_v2  }
   0x5   :  { %v213_v6 = vsel %vm187_vm0, %v34_v5, 0 }
   0x6   :  { %222 = vmatpush.bf16.xpose.msra.mxu0 %v213_v6  ;;  %905 = vmatpush.bf16.xpose.msra.mxu3 %v213_v6 }
   0x7   :  { %13 = vsyncpa [#allocation5], 0  ;;  %v62_v9 = vld [vmem:[%s1272_s2 + $0x58] sm:$0xff]  ;;  %v881_v10 = vld [vmem:[%s1271_s1] sm:$0xff]  ;;  %vm296_vm1 = vcmask 60416   ;;  %vm720_vm2 = vcmask 64512  }
   0x8   :  { %v886_v11 = vld [vmem:[%s1271_s1 + $0x28] sm:$0xff]  ;;  %v59_v13 = vld [vmem:[%s1272_s2 + $0x40] sm:$0xff]  ;;  %v57_v14 = vld [vmem:[%s1272_s2 + $0x30] sm:$0xff]  ;;  %vm316_vm3 = vcmask 57344   ;;  %s768_s29 = sshll.u32 %s1277_s7, 4  ;;  %s769_s29 = int_to_ptr.hbm [resolvable:$true] %s768_s29 }
   0x9   :  { %v60_v12 = vld [vmem:[%s1272_s2 + $0x48] sm:$0xff]  ;;  %v58_v15 = vld [vmem:[%s1272_s2 + $0x38] sm:$0xff]  ;;  %v55_v16 = vld [vmem:[%s1272_s2 + $0x20] sm:$0xff] }
   0xa   :  { %134 = vperm.xlu1 %917, %v64_v8   ;;  %v56_v17 = vld [vmem:[%s1272_s2 + $0x28] sm:$0xff]  ;;  %v887_v19 = vld [vmem:[%s1271_s1 + $0x30] sm:$0xff]  ;;  %v54_v20 = vld [vmem:[%s1272_s2 + $0x18] sm:$0xff] }
   0xb   :  { %144 = vperm.xlu0 %916, %v66_v7   ;;  %124 = vperm.xlu2 %918, %v62_v9   ;;  %v882_v18 = vld [vmem:[%s1271_s1 + $0x8] sm:$0xff]  ;;  %v53_v21 = vld [vmem:[%s1272_s2 + $0x10] sm:$0xff]  ;;  %v51_v22 = vld [vmem:[%s1272_s2] sm:$0xff] }
   0xc   :  { %v350_v23 = vld [vmem:[%s1274_s4] sm:$0xff]  ;;  %v52_v24 = vld [vmem:[%s1272_s2 + $0x8] sm:$0xff]  ;;  %v883_v26 = vld [vmem:[%s1271_s1 + $0x10] sm:$0xff] }
   0xd   :  { %809 = vmatmul.msk.bf16.vlgmr.msra.gmra.mxu0 %vm187_vm0, %v881_v10  ;;  %814 = vmatmul.msk.bf16.vlgmr.msra.gmra.mxu3 %vm187_vm0, %v886_v11  ;;  %v351_v25 = vld [vmem:[%s1274_s4 + $0x8] sm:$0xff]  ;;  %v888_v27 = vld [vmem:[%s1271_s1 + $0x38] sm:$0xff]  ;;  %v352_v29 = vld [vmem:[%s1274_s4 + $0x10] sm:$0xff] }
   0xe   :  { %v353_v28 = vld [vmem:[%s1274_s4 + $0x18] sm:$0xff]  ;;  %v354_v30 = vld [vmem:[%s1274_s4 + $0x20] sm:$0xff]  ;;  %v356_v31 = vld [vmem:[%s1274_s4 + $0x30] sm:$0xff] }
   0xf   :  { %v355_v32 = vld [vmem:[%s1274_s4 + $0x28] sm:$0xff]  ;;  %v357_v33 = vld [vmem:[%s1274_s4 + $0x38] sm:$0xff]  ;;  %v358_v36 = vld [vmem:[%s1274_s4 + $0x40] sm:$0xff] }
  0x10   :  { %v884_v34 = vld [vmem:[%s1271_s1 + $0x18] sm:$0xff]  ;;  %v359_v35 = vld [vmem:[%s1274_s4 + $0x48] sm:$0xff]  ;;  %v360_v37 = vld [vmem:[%s1274_s4 + $0x50] sm:$0xff] }
  0x11   :  { %v362_v38 = vld [vmem:[%s1274_s4 + $0x60] sm:$0xff]  ;;  %v361_v39 = vld [vmem:[%s1274_s4 + $0x58] sm:$0xff]  ;;  %v363_v40 = vld [vmem:[%s1274_s4 + $0x68] sm:$0xff] }
  0x12   :  { %114 = vperm.xlu1 %917, %v60_v12   ;;  %v885_v41 = vld [vmem:[%s1271_s1 + $0x20] sm:$0xff]  ;;  %v365_v42 = vld [vmem:[%s1274_s4 + $0x78] sm:$0xff]  ;;  %v364_v43 = vld [vmem:[%s1274_s4 + $0x70] sm:$0xff] }
  0x13   :  { %109 = vperm.xlu0 %916, %v59_v13   ;;  %99 = vperm.xlu2 %918, %v57_v14   ;;  %v608_v44 = vld [vmem:[%s1275_s5] sm:$0xff]  ;;  %v610_v45 = vld [vmem:[%s1275_s5 + $0x10] sm:$0xff]  ;;  %v609_v46 = vld [vmem:[%s1275_s5 + $0x8] sm:$0xff] }
  0x14   :  { %v611_v47 = vld [vmem:[%s1275_s5 + $0x18] sm:$0xff]  ;;  %v613_v48 = vld [vmem:[%s1275_s5 + $0x28] sm:$0xff]  ;;  %v612_v49 = vld [vmem:[%s1275_s5 + $0x20] sm:$0xff] }
  0x15   :  { %v614_v50 = vld [vmem:[%s1275_s5 + $0x30] sm:$0xff]  ;;  %v616_v52 = vld [vmem:[%s1275_s5 + $0x40] sm:$0xff]  ;;  %v615_v53 = vld [vmem:[%s1275_s5 + $0x38] sm:$0xff] }
  0x16   :  { %v617_v54 = vld [vmem:[%s1275_s5 + $0x48] sm:$0xff]  ;;  %v619_v56 = vld [vmem:[%s1275_s5 + $0x58] sm:$0xff]  ;;  %v618_v57 = vld [vmem:[%s1275_s5 + $0x50] sm:$0xff] }
  0x17   :  { %v620_v58 = vld [vmem:[%s1275_s5 + $0x60] sm:$0xff]  ;;  %v622_v61 = vld [vmem:[%s1275_s5 + $0x70] sm:$0xff]  ;;  %v621_v62 = vld [vmem:[%s1275_s5 + $0x68] sm:$0xff] }
  0x18   :  { %v623_v63 = vld [vmem:[%s1275_s5 + $0x78] sm:$0xff] }
  0x1a   :  { %89 = vperm.xlu1 %917, %v55_v16  }
  0x1b   :  { %104 = vperm.xlu0 %916, %v58_v15   ;;  %94 = vperm.xlu2 %918, %v56_v17  }
  0x1d   :  { %810 = vmatmul.msk.bf16.gmra.mxu0 %vm187_vm0, %v882_v18  ;;  %815 = vmatmul.msk.bf16.gmra.mxu3 %vm187_vm0, %v887_v19 }
  0x22   :  { %84 = vperm.xlu1 %917, %v54_v20  }
  0x23   :  { %79 = vperm.xlu0 %916, %v53_v21   ;;  %69 = vperm.xlu2 %918, %v51_v22  }
  0x2a   :  { %368 = vperm.xlu1 %917, %v350_v23  }
  0x2b   :  { %74 = vperm.xlu0 %916, %v52_v24   ;;  %373 = vperm.xlu2 %918, %v351_v25  }
  0x2d   :  { %811 = vmatmul.msk.bf16.gmra.mxu0 %vm187_vm0, %v883_v26  ;;  %816 = vmatmul.msk.bf16.gmra.mxu3 %vm187_vm0, %v888_v27 }
  0x32   :  { %383 = vperm.xlu1 %917, %v353_v28  }
  0x33   :  { %378 = vperm.xlu0 %916, %v352_v29   ;;  %388 = vperm.xlu2 %918, %v354_v30  }
  0x3a   :  { %398 = vperm.xlu1 %917, %v356_v31  }
  0x3b   :  { %393 = vperm.xlu0 %916, %v355_v32   ;;  %403 = vperm.xlu2 %918, %v357_v33  }
  0x3d   :  { %812 = vmatmul.msk.bf16.gmra.mxu0 %vm187_vm0, %v884_v34 }
  0x42   :  { %413 = vperm.xlu1 %917, %v359_v35  }
  0x43   :  { %408 = vperm.xlu0 %916, %v358_v36   ;;  %418 = vperm.xlu2 %918, %v360_v37  }
  0x4a   :  { %428 = vperm.xlu1 %917, %v362_v38  }
  0x4b   :  { %423 = vperm.xlu0 %916, %v361_v39   ;;  %433 = vperm.xlu2 %918, %v363_v40  }
  0x4d   :  { %813 = vmatmul.msk.bf16.gmra.mxu0 %vm187_vm0, %v885_v41 }
  0x52   :  { %443 = vperm.xlu1 %917, %v365_v42  }
  0x53   :  { %438 = vperm.xlu0 %916, %v364_v43   ;;  %626 = vperm.xlu2 %918, %v608_v44  }
  0x5a   :  { %636 = vperm.xlu1 %917, %v610_v45  }
  0x5b   :  { %631 = vperm.xlu0 %916, %v609_v46   ;;  %641 = vperm.xlu2 %918, %v611_v47  }
  0x5d   :  { %v120_v51 = vpop.permute.xlu2 %119 }
  0x62   :  { %651 = vperm.xlu1 %917, %v613_v48  }
  0x63   :  { %646 = vperm.xlu0 %916, %v612_v49   ;;  %656 = vperm.xlu2 %918, %v614_v50  }
  0x65   :  { %v125_v55 = vpop.permute.xlu2 %124 }
  0x6a   :  { %666 = vperm.xlu1 %917, %v616_v52  }
  0x6b   :  { %661 = vperm.xlu0 %916, %v615_v53   ;;  %671 = vperm.xlu2 %918, %v617_v54  }
  0x6d   :  { %v1158_v59 = vpop.permute.xlu2 %99 }
  0x72   :  { %681 = vperm.xlu1 %917, %v619_v56  }
  0x73   :  { %676 = vperm.xlu0 %916, %v618_v57   ;;  %686 = vperm.xlu2 %918, %v620_v58  }
  0x74   :  { %v130_v0 = vpop.permute.xlu1 %129 }
  0x75   :  { %v1160_v60 = vpop.permute.xlu0 %139  ;;  %v95_v2 = vpop.permute.xlu2 %94 }
  0x7a   :  { %696 = vperm.xlu1 %917, %v622_v61  }
  0x7b   :  { %691 = vperm.xlu0 %916, %v621_v62   ;;  %701 = vperm.xlu2 %918, %v623_v63  }
  0x7c   :  { %v135_v3 = vpop.permute.xlu1 %134 }
  0x7d   :  { %v1171_v1 = vpop.permute.xlu0 %144  ;;  %v70_v5 = vpop.permute.xlu2 %69 }
  0x84   :  { %v1175_v9 = vpop.permute.xlu1 %114 }
  0x85   :  { %v1173_v4 = vpop.permute.xlu0 %109 }
  0x8a   :  { %v224_v6 = vpop.f32.mrf.mxu0 }
  0x8b   :  { %v225_v7 = vadd.f32 %v224_v6, %v70_v5 }
  0x8c   :  { %v90_v18 = vpop.permute.xlu1 %89 }
  0x8d   :  { %v264_v8 = vmax.f32 %v225_v7, 0.0  ;;  %v1177_v10 = vpop.permute.xlu0 %104 }
  0x8f   :  { %v280_v11 = vpack.c.bf16 %v264_v8, %v264_v8 }
  0x90   :  { %v249_v12 = vpop.f32.mrf.mxu3 }
  0x91   :  { %297 = vst.msk [vmem:[#allocation2] sm:$0xf] %vm296_vm1, %v280_v11  ;;  %v250_v13 = vadd.f32 %v249_v12, %v120_v51 }
  0x92   :  { %v226_v14 = vpop.f32.mrf.mxu0 }
  0x93   :  { %v274_v15 = vmax.f32 %v250_v13, 0.0 }
  0x94   :  { %v85_v32 = vpop.permute.xlu1 %84 }
  0x95   :  { %v290_v16 = vpack.c.bf16 %v274_v15, %v274_v15  ;;  %v80_v17 = vpop.permute.xlu0 %79 }
  0x97   :  { %307 = vst.msk [vmem:[#allocation2 + $0x28] sm:$0xf] %vm296_vm1, %v290_v16 }
  0x98   :  { %v251_v19 = vpop.f32.mrf.mxu3 }
  0x99   :  { %v252_v20 = vadd.f32 %v251_v19, %v125_v55 }
  0x9a   :  { %v229_v21 = vpop.f32.mrf.mxu0 }
  0x9b   :  { %v275_v22 = vmax.f32 %v252_v20, 0.0  ;;  %v230_v23 = vadd.f32 %v229_v21, %v80_v17  ;;  %v893_v21 = vld [vmem:[%s1273_s3 + $0x20] sm:$0xff] }
  0x9d   :  { %v291_v24 = vpack.c.bf16 %v275_v22, %v275_v22  ;;  %v266_v25 = vmax.f32 %v230_v23, 0.0  ;;  %v75_v26 = vpop.permute.xlu0 %74  ;;  %v890_v22 = vld [vmem:[%s1273_s3 + $0x8] sm:$0xff] }
  0x9e   :  { %v227_v28 = vadd.f32 %v226_v14, %v75_v26  ;;  %v894_v23 = vld [vmem:[%s1273_s3 + $0x28] sm:$0xff]  ;;  %v892_v26 = vld [vmem:[%s1273_s3 + $0x18] sm:$0xff] }
  0x9f   :  { %308 = vst.msk [vmem:[#allocation2 + $0x2c] sm:$0xf] %vm296_vm1, %v291_v24  ;;  %v282_v27 = vpack.c.bf16 %v266_v25, %v266_v25  ;;  %v891_v24 = vld [vmem:[%s1273_s3 + $0x10] sm:$0xff] }
  0xa0   :  { %v254_v29 = vpop.f32.mrf.mxu3  ;;  %v265_v30 = vmax.f32 %v227_v28, 0.0  ;;  %v895_v25 = vld [vmem:[%s1273_s3 + $0x30] sm:$0xff]  ;;  %v369_v28 = vpop.permute.xlu1 %368 }
  0xa1   :  { %299 = vst.msk [vmem:[#allocation2 + $0x8] sm:$0xf] %vm296_vm1, %v282_v27  ;;  %v255_v31 = vadd.f32 %v254_v29, %v130_v0  ;;  %v896_v27 = vld [vmem:[%s1273_s3 + $0x38] sm:$0xff]  ;;  %v374_v29 = vpop.permute.xlu2 %373 }
  0xa2   :  { %v231_v33 = vpop.f32.mrf.mxu0  ;;  %v281_v34 = vpack.c.bf16 %v265_v30, %v265_v30 }
  0xa3   :  { %v276_v35 = vmax.f32 %v255_v31, 0.0  ;;  %v232_v36 = vadd.f32 %v231_v33, %v85_v32 }
  0xa4   :  { %298 = vst.msk [vmem:[#allocation2 + $0x4] sm:$0xf] %vm296_vm1, %v281_v34 }
  0xa5   :  { %v292_v37 = vpack.c.bf16 %v276_v35, %v276_v35  ;;  %v267_v38 = vmax.f32 %v232_v36, 0.0  ;;  %v379_v30 = vpop.permute.xlu0 %378 }
  0xa6   :  { %v902_v12 = vld [vmem:[#allocation2 + $0x28] sm:$0xff] }
  0xa7   :  { %309 = vst.msk [vmem:[#allocation2 + $0x30] sm:$0xf] %vm296_vm1, %v292_v37  ;;  %v283_v39 = vpack.c.bf16 %v267_v38, %v267_v38 }
  0xa8   :  { %v256_v40 = vpop.f32.mrf.mxu3  ;;  %v384_v31 = vpop.permute.xlu1 %383 }
  0xa9   :  { %300 = vst.msk [vmem:[#allocation2 + $0xc] sm:$0xf] %vm296_vm1, %v283_v39  ;;  %v257_v41 = vadd.f32 %v256_v40, %v135_v3  ;;  %v389_v32 = vpop.permute.xlu2 %388 }
  0xaa   :  { %v234_v42 = vpop.f32.mrf.mxu0 }
  0xab   :  { %v277_v43 = vmax.f32 %v257_v41, 0.0  ;;  %v235_v44 = vadd.f32 %v234_v42, %v90_v18  ;;  %v897_v20 = vld [vmem:[#allocation2] sm:$0xff] }
  0xad   :  { %v293_v45 = vpack.c.bf16 %v277_v43, %v277_v43  ;;  %v268_v46 = vmax.f32 %v235_v44, 0.0  ;;  %v394_v33 = vpop.permute.xlu0 %393 }
  0xaf   :  { %310 = vst.msk [vmem:[#allocation2 + $0x34] sm:$0xf] %vm296_vm1, %v293_v45  ;;  %v284_v47 = vpack.c.bf16 %v268_v46, %v268_v46 }
  0xb0   :  { %v259_v48 = vpop.f32.mrf.mxu3  ;;  %v898_v19 = vld [vmem:[#allocation2 + $0x8] sm:$0xff]  ;;  %v399_v34 = vpop.permute.xlu1 %398 }
  0xb1   :  { %301 = vst.msk [vmem:[#allocation2 + $0x10] sm:$0xf] %vm296_vm1, %v284_v47  ;;  %v260_v49 = vadd.f32 %v259_v48, %v1160_v60  ;;  %v1225_v35 = vpop.permute.xlu2 %403 }
  0xb2   :  { %v236_v50 = vpop.f32.mrf.mxu0 }
  0xb3   :  { %v278_v51 = vmax.f32 %v260_v49, 0.0  ;;  %v237_v52 = vadd.f32 %v236_v50, %v95_v2 }
  0xb5   :  { %v294_v53 = vpack.c.bf16 %v278_v51, %v278_v51  ;;  %v269_v54 = vmax.f32 %v237_v52, 0.0  ;;  %v409_v36 = vpop.permute.xlu0 %408 }
  0xb6   :  { %v903_v8 = vld [vmem:[#allocation2 + $0x30] sm:$0xff] }
  0xb7   :  { %311 = vst.msk [vmem:[#allocation2 + $0x38] sm:$0xf] %vm296_vm1, %v294_v53  ;;  %v285_v55 = vpack.c.bf16 %v269_v54, %v269_v54 }
  0xb8   :  { %v261_v56 = vpop.f32.mrf.mxu3  ;;  %v414_v38 = vpop.permute.xlu1 %413 }
  0xb9   :  { %302 = vst.msk [vmem:[#allocation2 + $0x14] sm:$0xf] %vm296_vm1, %v285_v55  ;;  %v262_v57 = vadd.f32 %v261_v56, %v1171_v1  ;;  %v1227_v39 = vpop.permute.xlu2 %418 }
  0xba   :  { %v239_v58 = vpop.f32.mrf.mxu0 }
  0xbb   :  { %v279_v61 = vmax.f32 %v262_v57, 0.0  ;;  %v240_v62 = vadd.f32 %v239_v58, %v1158_v59 }
  0xbd   :  { %v295_v63 = vpack.c.bf16 %v279_v61, %v279_v61  ;;  %v270_v0 = vmax.f32 %v240_v62, 0.0  ;;  %v1229_v42 = vpop.permute.xlu0 %423 }
  0xbf   :  { %312 = vst.msk [vmem:[#allocation2 + $0x3c] sm:$0xf] %vm296_vm1, %v295_v63  ;;  %v286_v60 = vpack.c.bf16 %v270_v0, %v270_v0 }
  0xc0   :  { %v899_v18 = vld [vmem:[#allocation2 + $0x10] sm:$0xff]  ;;  %v1231_v43 = vpop.permute.xlu1 %428 }
  0xc1   :  { %303 = vst.msk [vmem:[#allocation2 + $0x18] sm:$0xf] %vm296_vm1, %v286_v60  ;;  %v1233_v44 = vpop.permute.xlu2 %433 }
  0xc2   :  { %v241_v2 = vpop.f32.mrf.mxu0 }
  0xc3   :  { %v242_v3 = vadd.f32 %v241_v2, %v1177_v10 }
  0xc5   :  { %v271_v5 = vmax.f32 %v242_v3, 0.0  ;;  %v1235_v47 = vpop.permute.xlu0 %438 }
  0xc6   :  { %v904_v6 = vld [vmem:[#allocation2 + $0x38] sm:$0xff] }
  0xc7   :  { %v287_v7 = vpack.c.bf16 %v271_v5, %v271_v5  ;;  %542 = vmatpush.bf16.msra.mxu1 %v904_v6  ;;  %906 = vmatpush.bf16.msra.mxu2 %v904_v6 }
  0xc8   :  { %v1237_v48 = vpop.permute.xlu1 %443 }
  0xc9   :  { %304 = vst.msk [vmem:[#allocation2 + $0x1c] sm:$0xf] %vm296_vm1, %v287_v7  ;;  %v627_v50 = vpop.permute.xlu2 %626 }
  0xca   :  { %v244_v1 = vpop.f32.mrf.mxu0 }
  0xcb   :  { %v245_v59 = vadd.f32 %v244_v1, %v1173_v4  ;;  %543 = vmatpush.bf16.msra.mxu1 %v903_v8  ;;  %907 = vmatpush.bf16.msra.mxu2 %v903_v8 }
  0xcd   :  { %v272_v11 = vmax.f32 %v245_v59, 0.0  ;;  %v632_v52 = vpop.permute.xlu0 %631 }
  0xcf   :  { %v288_v13 = vpack.c.bf16 %v272_v11, %v272_v11  ;;  %544 = vmatpush.bf16.msra.mxu1 %v902_v12  ;;  %908 = vmatpush.bf16.msra.mxu2 %v902_v12 }
  0xd0   :  { %v900_v4 = vld [vmem:[#allocation2 + $0x18] sm:$0xff]  ;;  %v637_v54 = vpop.permute.xlu1 %636 }
  0xd1   :  { %305 = vst.msk [vmem:[#allocation2 + $0x20] sm:$0xf] %vm296_vm1, %v288_v13  ;;  %v642_v56 = vpop.permute.xlu2 %641 }
  0xd2   :  { %v246_v10 = vpop.f32.mrf.mxu0 }
  0xd3   :  { %v247_v14 = vadd.f32 %v246_v10, %v1175_v9  ;;  %v889_v9 = vld [vmem:[%s1273_s3] sm:$0xff] }
  0xd5   :  { %v273_v15 = vmax.f32 %v247_v14, 0.0  ;;  %v647_v63 = vpop.permute.xlu0 %646 }
  0xd7   :  { %v289_v16 = vpack.c.bf16 %v273_v15, %v273_v15 }
  0xd8   :  { %v652_v3 = vpop.permute.xlu1 %651 }
  0xd9   :  { %306 = vst.msk [vmem:[#allocation2 + $0x24] sm:$0xf] %vm296_vm1, %v289_v16  ;;  %v657_v1 = vpop.permute.xlu2 %656 }
  0xe0   :  { %v901_v17 = vld [vmem:[#allocation2 + $0x20] sm:$0xff] }
  0xe1   :  { %545 = vmatpush.bf16.msra.mxu1 %v901_v17  ;;  %909 = vmatpush.bf16.msra.mxu2 %v901_v17 }
  0xe5   :  { %546 = vmatpush.bf16.msra.mxu1 %v900_v4  ;;  %910 = vmatpush.bf16.msra.mxu2 %v900_v4 }
  0xe9   :  { %547 = vmatpush.bf16.msra.mxu1 %v899_v18  ;;  %911 = vmatpush.bf16.msra.mxu2 %v899_v18 }
  0xed   :  { %548 = vmatpush.bf16.msra.mxu1 %v898_v19  ;;  %912 = vmatpush.bf16.msra.mxu2 %v898_v19  ;;  %v662_v19 = vpop.permute.xlu0 %661 }
  0xf1   :  { %549 = vmatpush.bf16.msra.mxu1 %v897_v20  ;;  %913 = vmatpush.bf16.msra.mxu2 %v897_v20 }
  0xf4   :  { %550 = vmatmul.bf16.vlgmr.msra.gmra.mxu1 %v889_v9  ;;  %570 = vmatmul.bf16.vlgmr.msra.gmra.mxu2 %v893_v21 }
 0x104   :  { %555 = vmatmul.bf16.gmra.mxu1 %v890_v22  ;;  %575 = vmatmul.bf16.gmra.mxu2 %v894_v23  ;;  %v667_v23 = vpop.permute.xlu1 %666 }
 0x114   :  { %560 = vmatmul.bf16.gmra.mxu1 %v891_v24  ;;  %580 = vmatmul.bf16.gmra.mxu2 %v895_v25 }
 0x124   :  { %565 = vmatmul.bf16.gmra.mxu1 %v892_v26  ;;  %585 = vmatmul.bf16.gmra.mxu2 %v896_v27 }
 0x171   :  { %v551_v37 = vpop.f32.mrf.mxu1 }
 0x172   :  { %v552_v61 = vadd.f32 %v551_v37, %v369_v28  ;;  %v314_v28 = vstv %s1276_s6  ;;  %s946_s6 = smov [#allocation4]  }
 0x173   :  { %317 = vst.msk [vmem:[#allocation4] sm:$0x1] %vm316_vm3, %v314_v28  ;;  %s766_s26 = sshll.u32 %s946_s6, 4  ;;  %s767_s26 = int_to_ptr.vmem [resolvable:$true] %s766_s26 }
 0x174   :  { %v591_v5 = vmax.f32 %v552_v61, 0.0 }
 0x176   :  { %v704_v13 = vmul.f32 %v627_v50, %v591_v5 }
 0x177   :  { %v571_v40 = vpop.f32.mrf.mxu2 }
 0x178   :  { %v721_v20 = vsel %vm720_vm2, %v704_v13, 0.0  ;;  %v572_v24 = vadd.f32 %v571_v40, %v409_v36 }
 0x179   :  { %v553_v41 = vpop.f32.mrf.mxu1 }
 0x17a   :  { %v554_v57 = vadd.f32 %v553_v41, %v374_v29  ;;  %v672_v29 = vpop.permute.xlu2 %671  ;;  %v599_v40 = vmax.f32 %v572_v24, 0.0 }
 0x17c   :  { %v592_v60 = vmax.f32 %v554_v57, 0.0  ;;  %v712_v57 = vmul.f32 %v667_v23, %v599_v40 }
 0x17e   :  { %v705_v8 = vmul.f32 %v632_v52, %v592_v60  ;;  %v736_v5 = vsel %vm720_vm2, %v712_v57, 0.0 }
 0x17f   :  { %v573_v45 = vpop.f32.mrf.mxu2 }
 0x180   :  { %v722_v16 = vsel %vm720_vm2, %v705_v8, 0.0 }
 0x181   :  { %v556_v46 = vpop.f32.mrf.mxu1  ;;  %v723_v25 = vadd.f32 %v722_v16, %v721_v20 }
 0x182   :  { %v557_v62 = vadd.f32 %v556_v46, %v379_v30 }
 0x184   :  { %v593_v6 = vmax.f32 %v557_v62, 0.0 }
 0x186   :  { %v706_v10 = vmul.f32 %v637_v54, %v593_v6 }
 0x187   :  { %v576_v49 = vpop.f32.mrf.mxu2 }
 0x188   :  { %v724_v9 = vsel %vm720_vm2, %v706_v10, 0.0  ;;  %v577_v41 = vadd.f32 %v576_v49, %v1227_v39 }
 0x189   :  { %v558_v51 = vpop.f32.mrf.mxu1  ;;  %v725_v30 = vadd.f32 %v724_v9, %v723_v25 }
 0x18a   :  { %v559_v2 = vadd.f32 %v558_v51, %v384_v31  ;;  %v601_v61 = vmax.f32 %v577_v41, 0.0 }
 0x18c   :  { %v594_v59 = vmax.f32 %v559_v2, 0.0 }
 0x18e   :  { %v707_v17 = vmul.f32 %v642_v56, %v594_v59 }
 0x18f   :  { %v578_v53 = vpop.f32.mrf.mxu2 }
 0x190   :  { %v726_v26 = vsel %vm720_vm2, %v707_v17, 0.0  ;;  %v579_v54 = vadd.f32 %v578_v53, %v1229_v42 }
 0x191   :  { %v561_v55 = vpop.f32.mrf.mxu1  ;;  %v727_v37 = vadd.f32 %v726_v26, %v725_v30 }
 0x192   :  { %v562_v7 = vadd.f32 %v561_v55, %v389_v32  ;;  %v574_v32 = vadd.f32 %v573_v45, %v414_v38  ;;  %v677_v38 = vpop.permute.xlu0 %676  ;;  %v602_v60 = vmax.f32 %v579_v54, 0.0 }
 0x193   :  { %v714_v6 = vmul.f32 %v677_v38, %v601_v61 }
 0x194   :  { %v595_v14 = vmax.f32 %v562_v7, 0.0  ;;  %v600_v52 = vmax.f32 %v574_v32, 0.0 }
 0x196   :  { %v708_v21 = vmul.f32 %v647_v63, %v595_v14  ;;  %v713_v49 = vmul.f32 %v672_v29, %v600_v52 }
 0x197   :  { %v581_v58 = vpop.f32.mrf.mxu2 }
 0x198   :  { %v582_v62 = vadd.f32 %v581_v58, %v1231_v43  ;;  %v738_v43 = vsel %vm720_vm2, %v713_v49, 0.0 }
 0x199   :  { %v563_v0 = vpop.f32.mrf.mxu1 }
 0x19a   :  { %v564_v11 = vadd.f32 %v563_v0, %v394_v33  ;;  %v728_v33 = vsel %vm720_vm2, %v708_v21, 0.0  ;;  %v682_v0 = vpop.permute.xlu1 %681  ;;  %v603_v7 = vmax.f32 %v582_v62, 0.0  ;;  %v692_v14 = vpop.permute.xlu0 %691 }
 0x19b   :  { %v729_v51 = vadd.f32 %v728_v33, %v727_v37  ;;  %v715_v58 = vmul.f32 %v682_v0, %v602_v60  ;;  %v607_v33 = vld [vmem:[#allocation4] sm:$0x1] }
 0x19c   :  { %v596_v4 = vmax.f32 %v564_v11, 0.0 }
 0x19d   :  { %v742_v16 = vsel %vm720_vm2, %v715_v58, 0.0 }
 0x19e   :  { %v709_v27 = vmul.f32 %v652_v3, %v596_v4  ;;  %v687_v3 = vpop.permute.xlu2 %686 }
 0x19f   :  { %v583_v12 = vpop.f32.mrf.mxu2 }
 0x1a0   :  { %v730_v46 = vsel %vm720_vm2, %v709_v27, 0.0 }
 0x1a1   :  { %v566_v15 = vpop.f32.mrf.mxu1  ;;  %v731_v45 = vadd.f32 %v730_v46, %v729_v51 }
 0x1a2   :  { %v567_v18 = vadd.f32 %v566_v15, %v399_v34 }
 0x1a4   :  { %v597_v22 = vmax.f32 %v567_v18, 0.0  ;;  %v697_v18 = vpop.permute.xlu1 %696 }
 0x1a6   :  { %v710_v34 = vmul.f32 %v657_v1, %v597_v22  ;;  %v702_v9 = vpop.permute.xlu2 %701 }
 0x1a7   :  { %v586_v31 = vpop.f32.mrf.mxu2 }
 0x1a8   :  { %v732_v55 = vsel %vm720_vm2, %v710_v34, 0.0  ;;  %v587_v1 = vadd.f32 %v586_v31, %v1235_v47 }
 0x1a9   :  { %v568_v36 = vpop.f32.mrf.mxu1  ;;  %v733_v39 = vadd.f32 %v732_v55, %v731_v45 }
 0x1aa   :  { %v569_v50 = vadd.f32 %v568_v36, %v1225_v35  ;;  %v584_v35 = vadd.f32 %v583_v12, %v1233_v44  ;;  %v740_v44 = vsel %vm720_vm2, %v714_v6, 0.0  ;;  %v716_v12 = vmul.f32 %v687_v3, %v603_v7 }
 0x1ab   :  { %v605_v10 = vmax.f32 %v587_v1, 0.0 }
 0x1ac   :  { %v598_v56 = vmax.f32 %v569_v50, 0.0  ;;  %v604_v59 = vmax.f32 %v584_v35, 0.0 }
 0x1ad   :  { %v718_v20 = vmul.f32 %v697_v18, %v605_v10 }
 0x1ae   :  { %v711_v63 = vmul.f32 %v662_v19, %v598_v56  ;;  %v717_v17 = vmul.f32 %v692_v14, %v604_v59  ;;  %v744_v19 = vsel %vm720_vm2, %v716_v12, 0.0 }
 0x1af   :  { %v588_v53 = vpop.f32.mrf.mxu2  ;;  %v748_v24 = vsel %vm720_vm2, %v718_v20, 0.0 }
 0x1b0   :  { %v734_v2 = vsel %vm720_vm2, %v711_v63, 0.0  ;;  %v589_v11 = vadd.f32 %v588_v53, %v1237_v48  ;;  %v746_v48 = vsel %vm720_vm2, %v717_v17, 0.0 }
 0x1b1   :  { %v735_v42 = vadd.f32 %v734_v2, %v733_v39 }
 0x1b2   :  { %v606_v4 = vmax.f32 %v589_v11, 0.0 }
 0x1b3   :  { %v737_v8 = vadd.f32 %v736_v5, %v735_v42 }
 0x1b4   :  { %v719_v22 = vmul.f32 %v702_v9, %v606_v4 }
 0x1b5   :  { %v739_v13 = vadd.f32 %v738_v43, %v737_v8 }
 0x1b6   :  { %v750_v26 = vsel %vm720_vm2, %v719_v22, 0.0 }
 0x1b7   :  { %v741_v15 = vadd.f32 %v740_v44, %v739_v13 }
 0x1b9   :  { %v743_v47 = vadd.f32 %v742_v16, %v741_v15 }
 0x1bb   :  { %v745_v21 = vadd.f32 %v744_v19, %v743_v47 }
 0x1bd   :  { %v747_v23 = vadd.f32 %v746_v48, %v745_v21 }
 0x1bf   :  { %v749_v25 = vadd.f32 %v748_v24, %v747_v23 }
 0x1c1   :  { %v751_v27 = vadd.f32 %v750_v26, %v749_v25 }
 0x1c3   :  { %v752_v28 = vrot.slane %v751_v27, 4 }
 0x1c5   :  { %v753_v29 = vadd.f32 %v752_v28, %v751_v27 }
 0x1c7   :  { %v754_v30 = vrot.slane %v753_v29, 2 }
 0x1c9   :  { %v755_v31 = vadd.f32 %v754_v30, %v753_v29 }
 0x1cb   :  { %v756_v32 = vrot.slane %v755_v31, 1 }
 0x1cd   :  { %v757_v34 = vadd.f32 %v756_v32, %v755_v31 }
 0x1cf   :  { %v758_v37 = vadd.f32 %v757_v34, %v607_v33 }
 0x1d1   :  { %760 = vst.msk [vmem:[#allocation4] sm:$0x1] %vm316_vm3, %v758_v37 }
 0x1d2   :  { %771 = dma.vmem_to_hbm [thread:$0]  %s767_s26, 16, %s769_s29, [#allocation5]  }
 0x1d3   :  { %943 = dma.done.wait [#allocation5], 16  }
 0x1d4   :  { %944 = vsyncadd [#allocation5], 4294967280 }
 0x1d5   :  { %776 = vsyncpa [#allocation5], 1 }

</bundles_post_ra>
